<compile_context>
chip_gen: v7x
topology: tpu7x:2x2x1
jax: 0.10.0
libtpu: 0.0.40
codegen_flags: <defaults>
</compile_context>

<pallas_src>
import jax
import jax.numpy as jnp
from jax.experimental import pallas as pl
from jax.experimental.pallas import tpu as pltpu

_LANE = 128
_TARGET_BLOCK_BYTES = 4 * 1024 * 1024   # ~4 MiB per widest-dtype operand per block
_VMEM_LIMIT_BYTES = 48 * 1024 * 1024    # explicit scoped-VMEM limit (v5e/v6e/v7x safe)
_MASK_DTYPE = jnp.int8                  # packed 0/1 mask (1 byte/elem in HBM)


# ---------------------------------------------------------------------------
# Kernels (pure VPU elementwise bodies)
# ---------------------------------------------------------------------------
def _relu_fwd_kernel(x_ref, y_ref, m_ref):
    x = x_ref[...]
    # Same semantics as input * (input > 0).
    y_ref[...] = jnp.maximum(x, 0)
    # Packed 1-byte mask written alongside y (no separate un-fused `y > 0` op).
    m_ref[...] = (x > 0).astype(m_ref.dtype)


def _relu_bwd_kernel(d_ref, m_ref, dx_ref):
    # Consume the packed 1-byte mask directly: no wrapper-side cast to f32.
    d = d_ref[...]
    dx_ref[...] = jnp.where(m_ref[...] != 0, d, jnp.zeros_like(d))


# ---------------------------------------------------------------------------
# Tiling plan + generic elementwise launcher
# ---------------------------------------------------------------------------
def _sublane_align(*dtypes):
    """Packed min-tile sublane count: 8 (4B), 16 (2B), 32 (1B dtypes)."""
    min_itemsize = min(jnp.dtype(d).itemsize for d in dtypes)
    return max(8, 32 // min_itemsize)


def _plan_2d(n, widest_itemsize, align):
    """Choose (rows, cols, row_tile, pad) for a flat length-n elementwise op."""
    cols = None
    for c in (8192, 4096, 2048, 1024, 512, 256, _LANE):
        if n % c == 0:
            cols = c
            break

    if cols is None:
        # Ragged fallback: keep the lane dim wide; pad rows up to alignment.
        # TODO(synk): handle the tail with a masked store on the last grid step
        # instead of a wrapper-side jnp.pad copy.
        cols = 1024
        rows = -(-n // cols)
        rows = -(-rows // align) * align
        pad = rows * cols - n
    else:
        rows = n // cols
        pad = 0

    max_rt = max(align,
                 (_TARGET_BLOCK_BYTES // (cols * widest_itemsize)) // align * align)

    if rows <= max_rt:
        # Prefer >= 2 grid steps (v7x megacore) when rows split cleanly into
        # two aligned tiles; otherwise a single full-rows block (full-dim
        # exemption from the tile-divisibility rule).
        if rows >= 2 * align and rows % (2 * align) == 0:
            row_tile = rows // 2
        else:
            row_tile = rows
    else:
        # Largest align-multiple that divides rows and fits the VMEM budget.
        row_tile = None
        rt = max_rt
        while rt >= align:
            if rows % rt == 0:
                row_tile = rt
                break
            rt -= align
        if row_tile is None:
            # No clean divisor: pad rows so aligned tiles divide evenly.
            row_tile = max_rt
            new_rows = -(-rows // row_tile) * row_tile
            pad += (new_rows - rows) * cols
            rows = new_rows

    return rows, cols, row_tile, pad


def _run_elementwise(kernel, out_dtypes, *arrays):
    """Run an elementwise Pallas kernel over same-shaped arrays."""
    shape = arrays[0].shape
    n = arrays[0].size
    all_dtypes = tuple(a.dtype for a in arrays) + tuple(out_dtypes)
    widest = max(jnp.dtype(d).itemsize for d in all_dtypes)
    align = _sublane_align(*all_dtypes)
    rows, cols, row_tile, pad = _plan_2d(n, widest, align)

    def to2d(a):
        flat = a.reshape(-1)
        if pad:
            flat = jnp.pad(flat, (0, pad))
        return flat.reshape(rows, cols)

    ins = [to2d(a) for a in arrays]
    grid = (rows // row_tile,)
    spec = pl.BlockSpec((row_tile, cols), lambda i: (i, 0))

    outs = pl.pallas_call(
        kernel,
        out_shape=tuple(
            jax.ShapeDtypeStruct((rows, cols), d) for d in out_dtypes
        ),
        grid_spec=pltpu.PrefetchScalarGridSpec(
            num_scalar_prefetch=0,
            grid=grid,
            in_specs=[spec] * len(ins),
            out_specs=tuple(spec for _ in out_dtypes),
        ),
        compiler_params=pltpu.CompilerParams(
            dimension_semantics=("parallel",),
            vmem_limit_bytes=_VMEM_LIMIT_BYTES,
        ),
    )(*ins)

    if not isinstance(outs, (list, tuple)):
        outs = (outs,)

    def back(o):
        if pad:
            o = o.reshape(-1)[:n]
        return o.reshape(shape)

    return tuple(back(o) for o in outs)


# ---------------------------------------------------------------------------
# Module-equivalent API
# ---------------------------------------------------------------------------
def relu_forward(x):
    """Returns (y, cache_mask).

    y == input * (input > 0); cache_mask is the packed (int8 0/1) equivalent
    of `input > 0`, produced directly by the kernel to avoid a second pass
    over the output.
    """
    y, mask = _run_elementwise(_relu_fwd_kernel, (x.dtype, _MASK_DTYPE), x)
    return y, mask


def relu_man_backward(d_output, cache_mask):
    """d_output * cache_mask, consuming the packed mask directly in-kernel."""
    if cache_mask.dtype == jnp.bool_:
        # Accept a bool mask too; cast is 1B->1B (cheap) and only if needed.
        cache_mask = cache_mask.astype(_MASK_DTYPE)
    (dx,) = _run_elementwise(_relu_bwd_kernel, (d_output.dtype,),
                             d_output, cache_mask)
    return dx


if __name__ == "__main__":
    key = jax.random.PRNGKey(0)
    x = jax.random.normal(key, (2, 4, 16, 16), dtype=jnp.float32)

    y, mask = relu_forward(x)
    jax.block_until_ready((y, mask))

    # correctness check against reference semantics
    ref = x * (x > 0)
    assert y.shape == x.shape and y.dtype == x.dtype
    assert jnp.allclose(y, ref)
    assert mask.shape == x.shape
    assert bool(jnp.array_equal(mask != 0, x > 0))

    # man_backward check
    kd = jax.random.PRNGKey(1)
    d_out = jax.random.normal(kd, x.shape, dtype=jnp.float32)
    dx = relu_man_backward(d_out, mask)
    jax.block_until_ready(dx)
    assert jnp.allclose(dx, d_out * (x > 0))

    print("KERNEL_OK")
</pallas_src>

<mosaic_0001>
module attributes {stable_mosaic.version = 11 : i64} {
  func.func @_relu_fwd_kernel(%arg0: i32, %arg1: memref<1x2048xf32, #tpu.memory_space<vmem>>, %arg2: memref<1x2048xf32, #tpu.memory_space<vmem>>, %arg3: memref<1x2048xi8, #tpu.memory_space<vmem>>) attributes {dimension_semantics = [#tpu.dimension_semantics<parallel>], iteration_bounds = array<i64: 1>, scalar_prefetch = 0 : i64, scratch_operands = 0 : i64, tpu.core_type = #tpu.core_type<tc>, window_params = [{transform_indices = @transform_0, window_bounds = array<i64: 1, 2048>}, {transform_indices = @transform_1, window_bounds = array<i64: 1, 2048>}, {transform_indices = @transform_2, window_bounds = array<i64: 1, 2048>}]} {
    %c0 = arith.constant 0 : index
    %c0_0 = arith.constant 0 : index
    %0 = vector.load %arg1[%c0, %c0_0] : memref<1x2048xf32, #tpu.memory_space<vmem>>, vector<1x2048xf32>
    %cst = arith.constant 0.000000e+00 : f32
    %1 = vector.broadcast %cst : f32 to vector<1x2048xf32>
    %2 = arith.maximumf %0, %1 : vector<1x2048xf32>
    %c0_1 = arith.constant 0 : index
    %c0_2 = arith.constant 0 : index
    %3 = vector.load %arg2[%c0_1, %c0_2] : memref<1x2048xf32, #tpu.memory_space<vmem>>, vector<1x2048xf32>
    tpu.vector_store %arg2[%c0_1, %c0_2], %2 {strides = array<i32>} : memref<1x2048xf32, #tpu.memory_space<vmem>>, vector<1x2048xf32>,
    %cst_3 = arith.constant 0.000000e+00 : f32
    %4 = vector.broadcast %cst_3 : f32 to vector<1x2048xf32>
    %5 = arith.cmpf ogt, %0, %4 : vector<1x2048xf32>
    %6 = arith.extui %5 : vector<1x2048xi1> to vector<1x2048xi8>
    %c0_4 = arith.constant 0 : index
    %c0_5 = arith.constant 0 : index
    %7 = vector.load %arg3[%c0_4, %c0_5] : memref<1x2048xi8, #tpu.memory_space<vmem>>, vector<1x2048xi8>
    tpu.vector_store %arg3[%c0_4, %c0_5], %6 {strides = array<i32>} : memref<1x2048xi8, #tpu.memory_space<vmem>>, vector<1x2048xi8>,
    return
  }
  func.func @transform_0(%arg0: i32) -> (i32, i32) {
    %c0_i32 = arith.constant 0 : i32
    %c0_i32_0 = arith.constant 0 : i32
    return %arg0, %c0_i32 : i32, i32
  }
  func.func @transform_1(%arg0: i32) -> (i32, i32) {
    %c0_i32 = arith.constant 0 : i32
    %c0_i32_0 = arith.constant 0 : i32
    return %arg0, %c0_i32 : i32, i32
  }
  func.func @transform_2(%arg0: i32) -> (i32, i32) {
    %c0_i32 = arith.constant 0 : i32
    %c0_i32_0 = arith.constant 0 : i32
    return %arg0, %c0_i32 : i32, i32
  }
}

</mosaic_0001>

<bundles_post_ra>
// kernel: tpu_custom_call.1
= control target key start
LH: loop header
LB: loop body
LE: loop exit
PB: predicated region body
PF: predicated region fallthrough
CT: control target
= control target key end

     0   :  { %8 = vsyncpa [#allocation3], 0  ;;  %s702_s0 = inlined_call_operand.hbm [shape: f32[1,2048], index: 0, kind: input, shape index: {}]   ;;  %s703_s1 = inlined_call_operand.hbm [shape: f32[1,2048], index: 1, kind: output, shape index: {0}]   ;;  %s704_s2 = inlined_call_operand.hbm [shape: s8[1,2048], index: 2, kind: output, shape index: {1}]  }
   0x1   :  { %9 = vsyncpa [#allocation4], 0 }
   0x2   :  { %10 = vsyncpa [#allocation7], 0  ;;  %s493_s9 = smov [#allocation2]   ;;  %s421_s13 = scalar_lea.hbm %s702_s0, 256 }
   0x3   :  { %s17_s10 = sshll.u32 %s493_s9, 4  ;;  %p422_p0 = scmp.ne.s32.totalorder %s702_s0, %s421_s13  ;;  %s18_s10 = int_to_ptr.vmem [resolvable:$true] %s17_s10 }
   0x4   :  { %p425_p1 = scmp.lt.u32.totalorder %s421_s13, %s702_s0 }
   0x6   :  { %p427_p2 = pnand %p425_p1, %p422_p0 }
   0x8   :  { %430 = shalt.err (!%p427_p2)
}
   0x9   :  { %s431_s18 = scalar_lea.vmem %s18_s10, 256  ;;  %p436_p4 = scmp.lt.s32.totalorder %s18_s10, %s18_s10 }
   0xa   :  { %p432_p3 = scmp.ne.s32.totalorder %s18_s10, %s431_s18  ;;  %p437_p5 = scmp.lt.s32.totalorder %s431_s18, %s431_s18 }
   0xc   :  { %p438_p6 = por %p437_p5, %p436_p4 }
   0xe   :  { %p439_p7 = pnand %p438_p6, %p432_p3 }
  0x10   :  { %442 = shalt.err (!%p439_p7)
}
  0x11   :  { %20 = dma.hbm_to_vmem [thread:$0]  %s702_s0, 256, %s18_s10, [#allocation3]  }
  0x12   :  { %487 = dma.done.wait [#allocation3], 256  }
  0x13   :  { %488 = vsyncadd [#allocation3], 4294967040  ;;  %v39_v0 = vlaneseq  ;;  %v494_v1 = vmov 286326784   ;;  %v495_v3 = vmov 858989090   ;;  %vm346_vm0 = vcmask 1040384  }
  0x14   :  { %v37_v2 = vunpack.c.l.s4 %v494_v1  ;;  %v44_v4 = vunpack.c.l.s4 %v495_v3  ;;  %v496_v6 = vmov 1431651396   ;;  %v497_v8 = vmov 2004313702   ;;  %s499_s0 = smov [#allocation5]   ;;  %v26_v21 = vld [vmem:[#allocation2] sm:$0xff] }
  0x15   :  { %v40_v5 = vshrl.u32 %v39_v0, 7  ;;  %v51_v7 = vunpack.c.l.s4 %v496_v6  ;;  %v58_v9 = vunpack.c.l.s4 %v497_v8  ;;  %v498_v12 = vmov 1966171168   ;;  %s389_s21 = sshll.u32 %s499_s0, 4  ;;  %v27_v22 = vld [vmem:[#allocation2 + $0x8] sm:$0xff]  ;;  %s529_s21 = int_to_ptr.vmem [resolvable:$true] %s389_s21 }
  0x16   :  { %v38_v10 = vunpack.c.0.s8 %v37_v2  ;;  %v45_v11 = vunpack.c.0.s8 %v44_v4  ;;  %v120_v13 = vunpack.c.l.s4 %v498_v12  ;;  %vm347_vm1 = vsmask.f32 0  ;;  %s443_s22 = scalar_lea.vmem %s529_s21, 256  ;;  %p448_p9 = scmp.lt.s32.totalorder %s529_s21, %s529_s21 }
  0x17   :  { %v52_v14 = vunpack.c.0.s8 %v51_v7  ;;  %v59_v15 = vunpack.c.0.s8 %v58_v9  ;;  %vm349_vm2 = vcmask 1041409   ;;  %vm350_vm3 = vsmask.f32 1024  ;;  %vm537_vm8 = vmand %vm346_vm0, %vm347_vm1  ;;  %p444_p8 = scmp.ne.s32.totalorder %s529_s21, %s443_s22  ;;  %p449_p10 = scmp.lt.s32.totalorder %s443_s22, %s443_s22 }
  0x18   :  { %v121_v16 = vunpack.c.0.s8 %v120_v13  ;;  %v41_v17 = vsub.s32 %v38_v10, %v40_v5  ;;  %v48_v18 = vsub.s32 %v45_v11, %v40_v5  ;;  %vm353_vm4 = vcmask 1042434  }
  0x19   :  { %v55_v19 = vsub.s32 %v52_v14, %v40_v5  ;;  %v62_v20 = vsub.s32 %v59_v15, %v40_v5  ;;  %v28_v23 = vmax.f32 %v26_v21, 0.0  ;;  %vm32_vm5 = vcmp.gt.f32.partialorder %v26_v21, 0.0  ;;  %p450_p11 = por %p449_p10, %p448_p9 }
  0x1a   :  { %v29_v24 = vmax.f32 %v27_v22, 0.0  ;;  %vm33_vm6 = vcmp.gt.f32.partialorder %v27_v22, 0.0  ;;  %v500_v25 = vmov 0   ;;  %v532_v27 = vsub.s32 %v121_v16, %v40_v5 }
  0x1b   :  { %v34_v26 = vsel %vm32_vm5, 1, %v500_v25  ;;  %v35_v28 = vsel %vm33_vm6, 1, %v500_v25  ;;  %vm354_vm7 = vsmask.f32 2048  ;;  %30 = vst [vmem:[#allocation5] sm:$0xff] %v28_v23  ;;  %p451_p12 = pnand %p450_p11, %p444_p8 }
  0x1c   :  { %v42_v29 = vrot.slane %v34_v26, %v41_v17  ;;  %v49_v30 = vrot.slane %v34_v26, %v48_v18  ;;  %v56_v31 = vrot.slane %v34_v26, %v55_v19  ;;  %v63_v32 = vrot.slane %v34_v26, %v62_v20  ;;  %31 = vst [vmem:[#allocation5 + $0x8] sm:$0xff] %v29_v24 }
  0x1d   :  { %v70_v33 = vrot.slane %v35_v28, %v41_v17  ;;  %v77_v34 = vrot.slane %v35_v28, %v48_v18  ;;  %v84_v35 = vrot.slane %v35_v28, %v55_v19  ;;  %v91_v36 = vrot.slane %v35_v28, %v62_v20 }
  0x1e   :  { %454 = shalt.err (!%p451_p12)
}
  0x1f   :  { %s455_s25 = scalar_lea.hbm %s703_s1, 256 }
  0x20   :  { %p456_p13 = scmp.ne.s32.totalorder %s703_s1, %s455_s25  ;;  %p459_p0 = scmp.lt.u32.totalorder %s455_s25, %s703_s1 }
  0x22   :  { %p461_p1 = pnand %p459_p0, %p456_p13 }
  0x24   :  { %464 = shalt.err (!%p461_p1)
}
  0x25   :  { %392 = dma.vmem_to_hbm [thread:$0]  %s529_s21, 256, %s703_s1, [#allocation4]   ;;  %vm92_vm9 = vcmp.ne.s32.totalorder %v42_v29, 0  ;;  %vm93_vm10 = vcmp.ne.s32.totalorder %v49_v30, 0  ;;  %vm94_vm11 = vcmp.ne.s32.totalorder %v56_v31, 0  ;;  %vm95_vm12 = vcmp.ne.s32.totalorder %v63_v32, 0  ;;  %vm560_vm13 = vmand %vm349_vm2, %vm350_vm3 }
  0x26   :  { %v100_v39 = vsel %vm92_vm9, 1, %v500_v25  ;;  %v101_v40 = vsel %vm93_vm10, 1, %v500_v25  ;;  %v102_v41 = vsel %vm94_vm11, 1, %v500_v25  ;;  %v103_v42 = vsel %vm95_vm12, 1, %v500_v25  ;;  %vm352_vm2 = vmor %vm560_vm13, %vm537_vm8  ;;  %s501_s1 = smov [#allocation6]   ;;  %v380_v4 = vld [vmem:[#allocation6 + $0x8] sm:$0xff] }
  0x27   :  { %v108_v43 = vpack.c.b16 %v101_v40, %v100_v39  ;;  %v109_v44 = vpack.c.b16 %v103_v42, %v102_v41  ;;  %vm96_vm14 = vcmp.ne.s32.totalorder %v70_v33, 0  ;;  %vm97_vm15 = vcmp.ne.s32.totalorder %v77_v34, 0  ;;  %vm355_vm3 = vmand %vm353_vm4, %vm354_vm7  ;;  %s399_s4 = sshll.u32 %s501_s1, 4  ;;  %s400_s4 = int_to_ptr.vmem [resolvable:$true] %s399_s4 }
  0x28   :  { %vm98_vm0 = vcmp.ne.s32.totalorder %v84_v35, 0  ;;  %vm99_vm1 = vcmp.ne.s32.totalorder %v91_v36, 0  ;;  %v104_v45 = vsel %vm96_vm14, 1, %v500_v25  ;;  %v105_v46 = vsel %vm97_vm15, 1, %v500_v25  ;;  %vm579_vm10 = vmor %vm355_vm3, %vm352_vm2  ;;  %s465_s5 = scalar_lea.vmem %s400_s4, 256  ;;  %p470_p3 = scmp.lt.s32.totalorder %s400_s4, %s400_s4 }
  0x29   :  { %v110_v47 = vpack.c.b8 %v109_v44, %v108_v43  ;;  %v106_v48 = vsel %vm98_vm0, 1, %v500_v25  ;;  %v107_v49 = vsel %vm99_vm1, 1, %v500_v25  ;;  %v111_v50 = vpack.c.b16 %v105_v46, %v104_v45  ;;  %v377_v45 = vld [vmem:[#allocation6] sm:$0xff]  ;;  %p466_p2 = scmp.ne.s32.totalorder %s400_s4, %s465_s5  ;;  %p471_p4 = scmp.lt.s32.totalorder %s465_s5, %s465_s5 }
  0x2a   :  { %v112_v51 = vpack.c.b16 %v107_v49, %v106_v48  ;;  %vm357_vm5 = vcmask 1043459   ;;  %vm358_vm6 = vsmask.f32 3072  ;;  %vm361_vm11 = vcmask 1044484  }
  0x2b   :  { %vm114_vm9 = vnez %v110_v47  ;;  %vm584_vm8 = vmand %vm357_vm5, %vm358_vm6  ;;  %vm362_vm7 = vsmask.f32 4096  ;;  %vm365_vm12 = vcmask 1045509   ;;  %vm366_vm13 = vsmask.f32 5120  ;;  %p472_p5 = por %p471_p4, %p470_p3 }
  0x2c   :  { %v116_v52 = vsel %vm114_vm9, 16843009, %v500_v25  ;;  %v113_v53 = vpack.c.b8 %v112_v51, %v111_v50  ;;  %vm360_vm14 = vmor %vm584_vm8, %vm579_vm10  ;;  %vm370_vm0 = vsmask.f32 6144 }
  0x2d   :  { %v118_v55 = vcombine.high %v116_v52, %v116_v52  ;;  %v125_v56 = vrot.slane %v116_v52, %v532_v27  ;;  %vm600_vm1 = vmand %vm361_vm11, %vm362_vm7  ;;  %p473_p6 = pnand %p472_p5, %p466_p2 }
  0x2e   :  { %vm115_vm4 = vnez %v113_v53  ;;  %vm615_vm11 = vmor %vm600_vm1, %vm360_vm14 }
  0x2f   :  { %v132_v58 = vrot.slane %v118_v55, %v532_v27  ;;  %v133_v59 = vcombine.high %v125_v56, %v125_v56  ;;  %v141_v60 = vrot.slane %v125_v56, %v532_v27  ;;  %v117_v61 = vsel %vm115_vm4, 16843009, %v500_v25  ;;  %vm621_vm15 = vmand %vm365_vm12, %vm366_vm13 }
  0x30   :  { %v167_v62 = vcombine.high %v117_v61, %v117_v61  ;;  %v174_v63 = vrot.slane %v117_v61, %v532_v27  ;;  %vm368_vm8 = vmor %vm621_vm15, %vm615_vm11  ;;  %vm719_vm12 = vcmask 1046534  }
  0x31   :  { %v134_v0 = vcombine.high %v132_v58, %v132_v58  ;;  %v148_v1 = vrot.slane %v132_v58, %v532_v27  ;;  %v155_v2 = vrot.slane %v133_v59, %v532_v27  ;;  %v163_v3 = vcombine.high %v141_v60, %v141_v60  ;;  %vm371_vm13 = vmand %vm719_vm12, %vm370_vm0 }
  0x32   :  { %v181_v5 = vrot.slane %v167_v62, %v532_v27  ;;  %v182_v6 = vcombine.high %v174_v63, %v174_v63  ;;  %v190_v7 = vrot.slane %v174_v63, %v532_v27  ;;  %vm216_vm2 = vnez %v141_v60  ;;  %vm650_vm0 = vmor %vm371_vm13, %vm368_vm8 }
  0x33   :  { %v162_v8 = vrot.slane %v134_v0, %v532_v27  ;;  %v164_v9 = vcombine.high %v148_v1, %v148_v1  ;;  %v165_v10 = vcombine.high %v155_v2, %v155_v2  ;;  %vm217_vm6 = vnez %v155_v2 }
  0x34   :  { %v183_v11 = vcombine.high %v181_v5, %v181_v5  ;;  %vm218_vm9 = vnez %v163_v3  ;;  %vm220_vm4 = vnez %v148_v1  ;;  %v232_v12 = vsel %vm216_vm2, 16843009, %v500_v25 }
  0x35   :  { %v166_v14 = vcombine.high %v162_v8, %v162_v8  ;;  %vm219_vm7 = vnez %v165_v10  ;;  %vm221_vm3 = vnez %v162_v8  ;;  %vm222_vm5 = vnez %v164_v9 }
  0x36   :  { %v233_v16 = vsel %vm217_vm6, 16843009, %v500_v25  ;;  %v234_v17 = vsel %vm218_vm9, 16843009, %v500_v25  ;;  %v235_v18 = vsel %vm219_vm7, 16843009, %v500_v25  ;;  %v197_v19 = vrot.slane %v181_v5, %v532_v27 }
  0x37   :  { %vm223_vm10 = vnez %v166_v14  ;;  %v236_v20 = vsel %vm220_vm4, 16843009, %v500_v25  ;;  %v237_v21 = vsel %vm221_vm3, 16843009, %v500_v25  ;;  %v238_v22 = vsel %vm222_vm5, 16843009, %v500_v25 }
  0x38   :  { %v239_v23 = vsel %vm223_vm10, 16843009, %v500_v25  ;;  %v248_v24 = vcombine.low %v232_v12, %v233_v16  ;;  %v249_v26 = vcombine.low %v234_v17, %v235_v18  ;;  %v250_v28 = vcombine.low %v236_v20, %v237_v21 }
  0x39   :  { %v251_v29 = vcombine.low %v238_v22, %v239_v23  ;;  %v204_v30 = vrot.slane %v182_v6, %v532_v27  ;;  %v211_v31 = vrot.slane %v183_v11, %v532_v27  ;;  %v212_v32 = vcombine.high %v190_v7, %v190_v7 }
  0x3a   :  { %v258_v33 = vrot.slane %v248_v24, %v532_v27  ;;  %v265_v34 = vrot.slane %v249_v26, %v532_v27  ;;  %v272_v35 = vrot.slane %v250_v28, %v532_v27  ;;  %v213_v36 = vcombine.high %v197_v19, %v197_v19 }
  0x3b   :  { %v279_v37 = vrot.slane %v251_v29, %v532_v27  ;;  %v214_v38 = vcombine.high %v204_v30, %v204_v30  ;;  %v215_v39 = vcombine.high %v211_v31, %v211_v31  ;;  %vm224_vm14 = vnez %v190_v7 }
  0x3c   :  { %v280_v40 = vcombine.low %v258_v33, %v265_v34  ;;  %vm225_vm1 = vnez %v204_v30  ;;  %vm226_vm2 = vnez %v212_v32  ;;  %vm228_vm3 = vnez %v197_v19 }
  0x3d   :  { %v281_v42 = vcombine.low %v272_v35, %v279_v37  ;;  %vm722_vm5 = vsmask.f32 7168  ;;  %vm723_vm6 = vcmask 1047559   ;;  %vm227_vm4 = vnez %v214_v38 }
  0x3e   :  { %vm656_vm9 = vmand %vm723_vm6, %vm722_vm5  ;;  %vm229_vm7 = vnez %v211_v31  ;;  %vm230_vm10 = vnez %v213_v36  ;;  %v288_v44 = vrot.slane %v280_v40, %v532_v27  ;;  %vm231_vm15 = vnez %v215_v39 }
  0x3f   :  { %v240_v46 = vsel %vm224_vm14, 16843009, %v500_v25  ;;  %v241_v47 = vsel %vm225_vm1, 16843009, %v500_v25  ;;  %v295_v48 = vrot.slane %v281_v42, %v532_v27  ;;  %v242_v49 = vsel %vm226_vm2, 16843009, %v500_v25  ;;  %vm376_vm11 = vmor %vm656_vm9, %vm650_vm0 }
  0x40   :  { %v243_v50 = vsel %vm227_vm4, 16843009, %v500_v25  ;;  %v244_v51 = vsel %vm228_vm3, 16843009, %v500_v25  ;;  %v245_v52 = vsel %vm229_vm7, 16843009, %v500_v25  ;;  %v297_v55 = vcombine.low %v240_v46, %v241_v47 }
  0x41   :  { %v246_v53 = vsel %vm230_vm10, 16843009, %v500_v25  ;;  %v247_v54 = vsel %vm231_vm15, 16843009, %v500_v25  ;;  %v296_v56 = vcombine.low %v288_v44, %v295_v48  ;;  %v298_v57 = vcombine.low %v242_v49, %v243_v50 }
  0x42   :  { %v299_v58 = vcombine.low %v244_v51, %v245_v52  ;;  %v300_v59 = vcombine.low %v246_v53, %v247_v54  ;;  %v307_v60 = vrot.slane %v297_v55, %v532_v27 }
  0x43   :  { %v378_v61 = vsel %vm376_vm11, %v296_v56, %v377_v45  ;;  %v314_v62 = vrot.slane %v298_v57, %v532_v27 }
  0x44   :  { %v321_v63 = vrot.slane %v299_v58, %v532_v27  ;;  %v328_v0 = vrot.slane %v300_v59, %v532_v27  ;;  %379 = vst [vmem:[#allocation6] sm:$0xff] %v378_v61 }
  0x45   :  { %v329_v25 = vcombine.low %v307_v60, %v314_v62 }
  0x46   :  { %v330_v1 = vcombine.low %v321_v63, %v328_v0 }
  0x47   :  { %v337_v2 = vrot.slane %v329_v25, %v532_v27 }
  0x48   :  { %v344_v3 = vrot.slane %v330_v1, %v532_v27 }
  0x4a   :  { %v345_v5 = vcombine.low %v337_v2, %v344_v3 }
  0x4c   :  { %v381_v6 = vsel %vm376_vm11, %v345_v5, %v380_v4 }
  0x4d   :  { %382 = vst [vmem:[#allocation6 + $0x8] sm:$0xff] %v381_v6 }
  0x4e   :  { %476 = shalt.err (!%p473_p6)
}
  0x4f   :  { %s477_s8 = scalar_lea.hbm %s704_s2, 256 }
  0x50   :  { %p478_p7 = scmp.ne.s32.totalorder %s704_s2, %s477_s8  ;;  %p481_p8 = scmp.lt.u32.totalorder %s477_s8, %s704_s2 }
  0x52   :  { %p483_p9 = pnand %p481_p8, %p478_p7 }
  0x54   :  { %486 = shalt.err (!%p483_p9)
}
  0x55   :  { %402 = dma.vmem_to_hbm [thread:$0]  %s400_s4, 256, %s704_s2, [#allocation7]  }
  0x56   :  { %489 = dma.done.wait [#allocation4], 256  }
  0x57   :  { %490 = vsyncadd [#allocation4], 4294967040 }
  0x58   :  { %491 = dma.done.wait [#allocation7], 256  }
  0x59   :  { %492 = vsyncadd [#allocation7], 4294967040 }
  0x5a   :  { %409 = vsyncpa [#allocation3], 1 }
  0x5b   :  { %410 = vsyncpa [#allocation4], 1 }
  0x5c   :  { %411 = vsyncpa [#allocation7], 1 }

</bundles_post_ra>
